<compile_context>
chip_gen: v5e
topology: v5e:2x2
jax: 0.10.0
libtpu: 0.0.40
codegen_flags: <defaults>
</compile_context>

<pallas_src>
import functools

import jax
import jax.numpy as jnp
from jax.experimental import pallas as pl
from jax.experimental.pallas import tpu as pltpu


def _round_up(x, m):
    return ((x + m - 1) // m) * m


def _att_head_kernel(x_ref, w1_ref, b1_ref, w2_ref, b2_ref, out_ref, *,
                     compute_dtype):
    # x tile: [tile_n, L] in its native dtype; cast on the VPU (no extra HBM
    # pass in the wrapper).  Padded/garbage rows of a partial tile only affect
    # their own output column (no cross-row mixing) and are sliced away.
    x = x_ref[...].astype(compute_dtype)

    # fc1 on the MXU (f32 accumulation), bias + ReLU in f32 on the VPU.
    h = jnp.dot(x, w1_ref[...], preferred_element_type=jnp.float32)
    h = jnp.maximum(h + b1_ref[...], 0.0)                       # [tile_n, D]

    # fc2: contract the hidden dim of h against the single fc2 row so the MXU
    # emits a lane-dense [1, tile_n] score row directly -- no [tile_n, 128]
    # padded tile and no reshape/relayout of a large array.
    logits = jax.lax.dot_general(
        w2_ref[...], h.astype(compute_dtype),                   # [1,D] x [tile_n,D]
        dimension_numbers=(((1,), (1,)), ((), ())),
        preferred_element_type=jnp.float32,
    )                                                           # [1, tile_n]

    # Bias + sigmoid only on the live scores (tile_n EUP elements), then a
    # single lane-dense store.
    out_ref[...] = jax.nn.sigmoid(logits + b2_ref[...]).astype(out_ref.dtype)


def att_head(x, w1, b1, w2, b2, *, compute_dtype=jnp.bfloat16, max_tile_n=8192):
    """Pallas forward for Att_Head: sigmoid(relu(x @ w1 + b1) @ w2 + b2) -> [N, 1].

    x : [N, L]                 (L = FEATURE_DIM), any float dtype
    w1: [L, D], b1: [1, D]     (fc1 weight pre-transposed, D = ATT_IM_DIM)
    w2: [D, 1], b2: [1, 1]     (fc2 weight pre-transposed)
    """
    N, L = x.shape
    D = w1.shape[1]
    out_dtype = x.dtype

    # Tile the instance dim.  Large tiles amortize the ~0.35 us per-grid-step
    # cost.  When the grid has >1 step, tile_n is a multiple of 128 so the
    # output block stays lane-dense; otherwise the single block covers the
    # whole (small) array exactly.
    max_tile_n = _round_up(max_tile_n, 128)
    tile_n = min(max_tile_n, _round_up(N, 8))
    grid = (pl.cdiv(N, tile_n),)
    n_pad = grid[0] * tile_n          # width of the (1, n_pad) padded output

    # Tiny weight-side preprocessing (negligible; constant-folds under jit).
    w1c = w1.astype(compute_dtype)                       # [L, D]
    b1c = b1.reshape(1, D).astype(jnp.float32)           # [1, D]
    w2r = w2.reshape(1, D).astype(compute_dtype)         # fc2 as a row [1, D]
    b2c = b2.reshape(1, 1).astype(jnp.float32)           # [1, 1]

    cost = pl.CostEstimate(
        flops=2 * N * L * D + 2 * N * D,
        transcendentals=n_pad,
        bytes_accessed=(
            N * L * x.dtype.itemsize
            + (L * D + D) * jnp.dtype(compute_dtype).itemsize
            + (D + 1) * 4
            + n_pad * jnp.dtype(out_dtype).itemsize
        ),
    )

    out = pl.pallas_call(
        functools.partial(_att_head_kernel, compute_dtype=compute_dtype),
        out_shape=jax.ShapeDtypeStruct((1, n_pad), out_dtype),
        grid_spec=pltpu.PrefetchScalarGridSpec(
            num_scalar_prefetch=0,
            grid=grid,
            in_specs=[
                pl.BlockSpec((tile_n, L), lambda i: (i, 0)),   # streamed x tile
                pl.BlockSpec((L, D), lambda i: (0, 0)),        # resident fc1 W
                pl.BlockSpec((1, D), lambda i: (0, 0)),        # resident fc1 b
                pl.BlockSpec((1, D), lambda i: (0, 0)),        # resident fc2 row
                pl.BlockSpec((1, 1), lambda i: (0, 0)),        # resident fc2 b
            ],
            out_specs=pl.BlockSpec((1, tile_n), lambda i: (0, i)),
        ),
        compiler_params=pltpu.CompilerParams(
            dimension_semantics=("parallel",),
            vmem_limit_bytes=32 * 1024 * 1024,
        ),
        cost_estimate=cost,
    )(x, w1c, b1c, w2r, b2c)

    # Lane-dense [1, n_pad] score row -> [N, 1]; the slice touches only
    # n_pad * 4 bytes (vs. a full [N, 128] pass previously).
    return out[0, :N].reshape(N, 1)


def init_params(key, feature_dim, att_im_dim, dtype=jnp.float32):
    """Deterministic synthetic parameters matching nn.Linear shapes
    (stored transposed so the kernel computes x @ W)."""
    ks = jax.random.split(key, 4)
    w1 = jax.random.normal(ks[0], (feature_dim, att_im_dim), dtype) * 0.05
    b1 = jax.random.normal(ks[1], (1, att_im_dim), dtype) * 0.05
    w2 = jax.random.normal(ks[2], (att_im_dim, 1), dtype) * 0.05
    b2 = jax.random.normal(ks[3], (1, 1), dtype) * 0.05
    return w1, b1, w2, b2


if __name__ == "__main__":
    # Small shapes consistent with the module: N instances, FEATURE_DIM in,
    # ATT_IM_DIM hidden, single attention score out.
    N, FEATURE_DIM, ATT_IM_DIM = 16, 32, 16

    key = jax.random.PRNGKey(0)
    kx, kx2, kp = jax.random.split(key, 3)
    w1, b1, w2, b2 = init_params(kp, FEATURE_DIM, ATT_IM_DIM)

    def reference(xv):
        h = jnp.maximum(xv @ w1 + b1, 0.0)
        return jax.nn.sigmoid(h @ w2 + b2)

    # Single-block, exact-fit case (block == array).
    x = jax.random.normal(kx, (N, FEATURE_DIM), jnp.float32)
    y = jax.jit(att_head)(x, w1, b1, w2, b2)
    jax.block_until_ready(y)
    assert y.shape == (N, 1)
    assert jnp.allclose(y, reference(x), atol=1e-2, rtol=1e-2), float(
        jnp.max(jnp.abs(y - reference(x)))
    )

    # Multi-block case with a partial last x tile (exercises the grid path and
    # the no-wrapper-pad behavior) by forcing a small tile.
    N2 = 250
    x2 = jax.random.normal(kx2, (N2, FEATURE_DIM), jnp.float32)
    y2 = jax.jit(functools.partial(att_head, max_tile_n=128))(x2, w1, b1, w2, b2)
    jax.block_until_ready(y2)
    assert y2.shape == (N2, 1)
    assert jnp.allclose(y2, reference(x2), atol=1e-2, rtol=1e-2), float(
        jnp.max(jnp.abs(y2 - reference(x2)))
    )

    print("KERNEL_OK")
</pallas_src>

<mosaic_0001>
module attributes {stable_mosaic.version = 11 : i64} {
  func.func @_att_head_kernel(%arg0: i32, %arg1: memref<16x32xf32, #tpu.memory_space<vmem>>, %arg2: memref<32x16xbf16, #tpu.memory_space<vmem>>, %arg3: memref<1x16xf32, #tpu.memory_space<vmem>>, %arg4: memref<1x16xbf16, #tpu.memory_space<vmem>>, %arg5: memref<1x1xf32, #tpu.memory_space<vmem>>, %arg6: memref<1x16xf32, #tpu.memory_space<vmem>>) attributes {dimension_semantics = [#tpu.dimension_semantics<parallel>], iteration_bounds = array<i64: 1>, scalar_prefetch = 0 : i64, scratch_operands = 0 : i64, tpu.core_type = #tpu.core_type<tc>, window_params = [{transform_indices = @transform_0, window_bounds = array<i64: 16, 32>}, {pipeline_mode = #tpu.pipeline_mode<synchronous>, transform_indices = @transform_1, window_bounds = array<i64: 32, 16>}, {pipeline_mode = #tpu.pipeline_mode<synchronous>, transform_indices = @transform_2, window_bounds = array<i64: 1, 16>}, {pipeline_mode = #tpu.pipeline_mode<synchronous>, transform_indices = @transform_3, window_bounds = array<i64: 1, 16>}, {pipeline_mode = #tpu.pipeline_mode<synchronous>, transform_indices = @transform_4, window_bounds = array<i64: 1, 1>}, {transform_indices = @transform_5, window_bounds = array<i64: 1, 16>}]} {
    %c0 = arith.constant 0 : index
    %c0_0 = arith.constant 0 : index
    %0 = vector.load %arg1[%c0, %c0_0] : memref<16x32xf32, #tpu.memory_space<vmem>>, vector<16x32xf32>
    %1 = arith.truncf %0 : vector<16x32xf32> to vector<16x32xbf16>
    %c0_1 = arith.constant 0 : index
    %c0_2 = arith.constant 0 : index
    %2 = vector.load %arg2[%c0_1, %c0_2] : memref<32x16xbf16, #tpu.memory_space<vmem>>, vector<32x16xbf16>
    %cst = arith.constant dense<0.000000e+00> : vector<16x16xf32>
    %3 = tpu.matmul %1, %2, %cst {dimension_numbers = #tpu.dot_dimension_numbers<[1], [0], [0], [1], [0, 0, 1, 1], [], []>} : vector<16x32xbf16>, vector<32x16xbf16>, vector<16x16xf32> -> vector<16x16xf32>
    %c0_3 = arith.constant 0 : index
    %c0_4 = arith.constant 0 : index
    %4 = vector.load %arg3[%c0_3, %c0_4] : memref<1x16xf32, #tpu.memory_space<vmem>>, vector<1x16xf32>
    %5 = vector.broadcast %4 : vector<1x16xf32> to vector<16x16xf32>
    %6 = arith.addf %3, %5 : vector<16x16xf32>
    %cst_5 = arith.constant 0.000000e+00 : f32
    %7 = vector.broadcast %cst_5 : f32 to vector<16x16xf32>
    %8 = arith.maximumf %6, %7 : vector<16x16xf32>
    %c0_6 = arith.constant 0 : index
    %c0_7 = arith.constant 0 : index
    %9 = vector.load %arg4[%c0_6, %c0_7] : memref<1x16xbf16, #tpu.memory_space<vmem>>, vector<1x16xbf16>
    %10 = arith.truncf %8 : vector<16x16xf32> to vector<16x16xbf16>
    %cst_8 = arith.constant dense<0.000000e+00> : vector<1x16xf32>
    %11 = tpu.matmul %9, %10, %cst_8 {dimension_numbers = #tpu.dot_dimension_numbers<[1], [1], [0], [0], [0, 0, 1, 0], [], []>} : vector<1x16xbf16>, vector<16x16xbf16>, vector<1x16xf32> -> vector<1x16xf32>
    %c0_9 = arith.constant 0 : index
    %c0_10 = arith.constant 0 : index
    %12 = vector.load %arg5[%c0_9, %c0_10] : memref<1x1xf32, #tpu.memory_space<vmem>>, vector<1x1xf32>
    %13 = vector.broadcast %12 : vector<1x1xf32> to vector<1x16xf32>
    %14 = arith.addf %11, %13 : vector<1x16xf32>
    %15 = arith.negf %14 : vector<1x16xf32>
    %16 = math.exp %15 : vector<1x16xf32>
    %cst_11 = arith.constant 1.000000e+00 : f32
    %17 = vector.broadcast %cst_11 : f32 to vector<1x16xf32>
    %18 = arith.addf %17, %16 : vector<1x16xf32>
    %19 = arith.divf %17, %18 : vector<1x16xf32>
    %c0_12 = arith.constant 0 : index
    %c0_13 = arith.constant 0 : index
    %20 = vector.load %arg6[%c0_12, %c0_13] : memref<1x16xf32, #tpu.memory_space<vmem>>, vector<1x16xf32>
    tpu.vector_store %arg6[%c0_12, %c0_13], %19 {strides = array<i32>} : memref<1x16xf32, #tpu.memory_space<vmem>>, vector<1x16xf32>,
    return
  }
  func.func @transform_0(%arg0: i32) -> (i32, i32) {
    %c0_i32 = arith.constant 0 : i32
    %c0_i32_0 = arith.constant 0 : i32
    return %arg0, %c0_i32 : i32, i32
  }
  func.func @transform_1(%arg0: i32) -> (i32, i32) {
    %c0_i32 = arith.constant 0 : i32
    %c0_i32_0 = arith.constant 0 : i32
    %c0_i32_1 = arith.constant 0 : i32
    return %c0_i32, %c0_i32_0 : i32, i32
  }
  func.func @transform_2(%arg0: i32) -> (i32, i32) {
    %c0_i32 = arith.constant 0 : i32
    %c0_i32_0 = arith.constant 0 : i32
    %c0_i32_1 = arith.constant 0 : i32
    return %c0_i32, %c0_i32_0 : i32, i32
  }
  func.func @transform_3(%arg0: i32) -> (i32, i32) {
    %c0_i32 = arith.constant 0 : i32
    %c0_i32_0 = arith.constant 0 : i32
    %c0_i32_1 = arith.constant 0 : i32
    return %c0_i32, %c0_i32_0 : i32, i32
  }
  func.func @transform_4(%arg0: i32) -> (i32, i32) {
    %c0_i32 = arith.constant 0 : i32
    %c0_i32_0 = arith.constant 0 : i32
    %c0_i32_1 = arith.constant 0 : i32
    return %c0_i32, %c0_i32_0 : i32, i32
  }
  func.func @transform_5(%arg0: i32) -> (i32, i32) {
    %c0_i32 = arith.constant 0 : i32
    %c0_i32_0 = arith.constant 0 : i32
    return %c0_i32, %arg0 : i32, i32
  }
}

</mosaic_0001>

<bundles_post_ra>
// kernel: att_head.1
= control target key start
LH: loop header
LB: loop body
LE: loop exit
PB: predicated region body
PF: predicated region fallthrough
CT: control target
= control target key end

     0   :  { %s236_s0 = inlined_call_operand.vmem [shape: f32[16,32], index: 0, kind: input, shape index: {}]   ;;  %s237_s1 = inlined_call_operand.vmem [shape: bf16[32,16], index: 1, kind: input, shape index: {}]   ;;  %s238_s2 = inlined_call_operand.vmem [shape: f32[1,16], index: 2, kind: input, shape index: {}]   ;;  %s239_s3 = inlined_call_operand.vmem [shape: bf16[1,16], index: 3, kind: input, shape index: {}]   ;;  %s240_s4 = inlined_call_operand.<no memory space> [shape: f32[1,1], index: 4, kind: input, shape index: {}]   ;;  %s241_s5 = inlined_call_operand.hbm [shape: f32[1,16], index: 5, kind: output, shape index: {}]  }
   0x1   :  { %v10_v0 = vstv %s240_s4 }
   0x2   :  { %11 = vst [vmem:[#allocation2] sm:$0x1] %v10_v0 }
   0x3   :  { %v145_v1 = vld [vmem:[%s237_s1 + $0x8] sm:$0xff]  ;;  %v144_v2 = vld [vmem:[%s237_s1] sm:$0xff] }
   0x4   :  { %57 = vmatpush.bf16.msra.mxu0 %v145_v1  ;;  %v24_v3 = vld [vmem:[%s236_s0] sm:$0xff]  ;;  %v25_v4 = vld [vmem:[%s236_s0 + $0x8] sm:$0xff] }
   0x5   :  { %12 = vsyncpa [#allocation4], 0  ;;  %v26_v5 = vpack.c.bf16 %v25_v4, %v24_v3  ;;  %vm47_vm0 = vcmask 261120   ;;  %v180_v7 = vmov 0   ;;  %v149_v9 = vld [vmem:[%s238_s2] ss:$0 sm:$0xff] }
   0x6   :  { %148 = vset.pattern.permute.xlu0 %v180_v7  ;;  %vm76_vm1 = vcmask 130048   ;;  %v67_v17 = vld [vmem:[%s239_s3] sm:$0x1]  ;;  %s181_s2 = smov [#allocation3]   ;;  %s124_s6 = sshll.u32 %s241_s5, 4  ;;  %vm115_vm5 = vcmask 122880   ;;  %s125_s6 = int_to_ptr.hbm [resolvable:$true] %s124_s6 }
   0x7   :  { %s122_s3 = sshll.u32 %s181_s2, 4  ;;  %s123_s3 = int_to_ptr.vmem [resolvable:$true] %s122_s3 }
   0x8   :  { %58 = vmatpush.bf16.msra.mxu0 %v144_v2 }
   0x9   :  { %v69_v6 = vld [vmem:[#allocation2] sm:$0x1] }
   0xa   :  { %72 = vperm.xlu0 %148, %v69_v6  }
   0xb   :  { %141 = vmatmul.msk.bf16.vlgmr.msra.gmra.mxu0 %vm47_vm0, %v26_v5 }
  0x7c   :  { %v73_v18 = vpop.permute.xlu0 %72 }
  0x7d   :  { %v75_v19 = vperm.slane %v73_v18, 0 }
  0x88   :  { %v60_v8 = vpop.f32.mrf.mxu0 }
  0x89   :  { %v61_v10 = vadd.f32 %v149_v9, %v60_v8 }
  0x8b   :  { %v65_v13 = vmax.f32 %v61_v10, 0.0 }
  0x90   :  { %v62_v11 = vpop.f32.mrf.mxu0 }
  0x91   :  { %v63_v12 = vadd.f32 %v149_v9, %v62_v11 }
  0x93   :  { %v66_v14 = vmax.f32 %v63_v12, 0.0 }
  0x95   :  { %v68_v15 = vpack.c.bf16 %v66_v14, %v65_v13 }
  0x97   :  { %v81_v16 = vsel %vm76_vm1, %v68_v15, 0 }
  0x98   :  { %90 = vmatpush.bf16.xpose.msra.mxu1 %v81_v16 }
  0x9f   :  { %142 = vmatmul.msk.bf16.vlgmr.msra.gmra.mxu1 %vm76_vm1, %v67_v17 }
 0x11c   :  { %v92_v20 = vpop.f32.mrf.mxu1 }
 0x11d   :  { %v93_v21 = vadd.f32 %v92_v20, %v75_v19 }
 0x11f   :  { %v143_v22 = vmul.f32 -1.442695, %v93_v21 }
 0x121   :  { %150 = vpow2.f32 %v143_v22 }
 0x124   :  { %v94_v23 = vpop.f32.mrf.mxu1 }
 0x127   :  { %v151_v24 = vpop.eup %150 }
 0x128   :  { %v99_v25 = vadd.f32 1.0, %v151_v24 }
 0x12a   :  { %152 = vrcp.f32 %v99_v25  ;;  %v111_v29 = vand.u32 2147483648, %v99_v25  ;;  %v109_v31 = vand.u32 2147483647, %v99_v25  ;;  %vm105_vm3 = vweird.f32 %v99_v25 }
 0x12c   :  { %v112_v33 = vor.u32 1.1754944e-38, %v111_v29  ;;  %vm110_vm6 = vcmp.eq.f32.partialorder %v109_v31, 8.507059e+37 }
 0x130   :  { %v153_v26 = vpop.eup %152 }
 0x131   :  { %v101_v27 = vmul.f32 %v153_v26, %v99_v25  ;;  %vm106_vm2 = vweird.f32 %v153_v26 }
 0x132   :  { %vm107_vm4 = vmor %vm105_vm3, %vm106_vm2 }
 0x133   :  { %v102_v28 = vsub.f32 1.0, %v101_v27 }
 0x135   :  { %v103_v30 = vmul.f32 %v153_v26, %v102_v28 }
 0x137   :  { %v104_v32 = vadd.f32 %v153_v26, %v103_v30 }
 0x139   :  { %v108_v34 = vsel %vm107_vm4, %v153_v26, %v104_v32 }
 0x13a   :  { %v113_v35 = vsel %vm110_vm6, %v112_v33, %v108_v34 }
 0x13b   :  { %116 = vst.msk [vmem:[#allocation3] sm:$0x1] %vm115_vm5, %v113_v35 }
 0x13c   :  { %127 = dma.vmem_to_hbm [thread:$0]  %s123_s3, 16, %s125_s6, [#allocation4]  }
 0x13d   :  { %178 = dma.done.wait [#allocation4], 16  }
 0x13e   :  { %179 = vsyncadd [#allocation4], 4294967280 }
 0x13f   :  { %132 = vsyncpa [#allocation4], 1 }

</bundles_post_ra>
